<compile_context>
chip_gen: v7x
topology: tpu7x:2x2x1
jax: 0.10.0
libtpu: 0.0.40
codegen_flags: <defaults>
</compile_context>

<pallas_src>
import jax
import jax.numpy as jnp
from jax.experimental import pallas as pl
from jax.experimental.pallas import tpu as pltpu


_SUBLANE = 8
_VMEM_BUDGET_BYTES = 24 * 1024 * 1024     # stays under v7x 64 MiB and 32 MiB scoped default
_DEFAULT_SCOPED_VMEM = 32 * 1024 * 1024


def _round_up(n, m):
    return ((n + m - 1) // m) * m


def _transfer_kernel(x_ref, w_ref, p_ref, o_ref):
    """y = tanh(x @ W + lin_bias) * (2*std) + bias, for one batch tile."""
    w = w_ref[...]
    x = x_ref[...].astype(w.dtype)            # bf16 (or f32) operands for the MXU
    y = jnp.dot(x, w, preferred_element_type=jnp.float32)
    p = p_ref[...]                            # (3, out_dim) f32: [lin_bias; 2*std; bias]
    y = jnp.tanh(y + p[0:1, :])               # f32 elementwise chain (v5e-friendly)
    o_ref[...] = (y * p[1:2, :] + p[2:3, :]).astype(o_ref.dtype)


def pack_transfer_params(lin_bias, std, bias):
    """Weight-load-time packing: ONE (3, out_dim) f32 tile [lin_bias; 2*std; bias].

    Call this once when the checkpoint is loaded, never per forward call."""
    return jnp.stack(
        [lin_bias.astype(jnp.float32),
         2.0 * std.astype(jnp.float32),
         bias.astype(jnp.float32)],
        axis=0,
    )


def _vmem_bytes(tile_m, in_dim, out_dim, x_b, w_b, o_b):
    # Double-buffered x/out tiles + (conservatively also double-buffered)
    # resident W and packed params.
    return (2 * tile_m * in_dim * x_b
            + 2 * tile_m * out_dim * o_b
            + 2 * in_dim * out_dim * w_b
            + 2 * 3 * out_dim * 4)


def transfer_net_forward(x, w, params, *, max_tile_m=256):
    """TransferNet forward.

    x:      [B, in_dim]        activations (f32)
    w:      [in_dim, out_dim]  pre-transposed nn.Linear weight (bf16 or f32)
    params: [3, out_dim]       packed (lin_bias, 2*std, bias) from pack_transfer_params
    returns [B, out_dim]
    """
    B, in_dim = x.shape
    p_rows, out_dim = params.shape
    assert p_rows == 3 and w.shape == (in_dim, out_dim)

    # ---- tile sizing: sublane-aligned, VMEM-budgeted ------------------------
    max_tile_m = max(_SUBLANE, (max_tile_m // _SUBLANE) * _SUBLANE)
    b_pad = _round_up(B, _SUBLANE)
    tile_m = min(b_pad, max_tile_m)
    x_b, w_b, o_b = x.dtype.itemsize, w.dtype.itemsize, x.dtype.itemsize
    while (tile_m > _SUBLANE
           and _vmem_bytes(tile_m, in_dim, out_dim, x_b, w_b, o_b) > _VMEM_BUDGET_BYTES):
        tile_m = max(_SUBLANE, _round_up(tile_m // 2, _SUBLANE))

    single_block = tile_m >= b_pad
    grid_m = 1 if single_block else pl.cdiv(b_pad, tile_m)
    rows = b_pad if single_block else grid_m * tile_m

    if rows != B:  # zero-pad awkward batch sizes; padded rows sliced off below
        x = jnp.pad(x, ((0, rows - B), (0, 0)))

    # ---- compiler params / cost hint ----------------------------------------
    est = _vmem_bytes(tile_m, in_dim, out_dim, x_b, w_b, o_b)
    vmem_limit = None
    if est > _DEFAULT_SCOPED_VMEM:
        vmem_limit = min(int(est * 1.25), 60 * 1024 * 1024)

    cost = pl.CostEstimate(
        flops=2 * rows * in_dim * out_dim + 3 * rows * out_dim,
        transcendentals=rows * out_dim,
        bytes_accessed=(rows * in_dim * x_b + in_dim * out_dim * w_b
                        + 3 * out_dim * 4 + rows * out_dim * o_b),
    )
    out_shape = jax.ShapeDtypeStruct((rows, out_dim), x.dtype)

    if single_block:
        # One batch tile: no grid, no pipeline machinery — whole arrays in VMEM.
        cparams = (pltpu.CompilerParams(vmem_limit_bytes=vmem_limit)
                   if vmem_limit is not None else None)
        out = pl.pallas_call(
            _transfer_kernel,
            out_shape=out_shape,
            in_specs=[pl.BlockSpec(memory_space=pltpu.MemorySpace.VMEM)] * 3,
            out_specs=pl.BlockSpec(memory_space=pltpu.MemorySpace.VMEM),
            cost_estimate=cost,
            compiler_params=cparams,
        )(x, w, params)
    else:
        # Batch-tiled grid; "parallel" lets v7x shard rows across both TCs.
        # W / params index_maps are constant, so they stay resident across steps.
        cparams = pltpu.CompilerParams(
            dimension_semantics=("parallel",),
            vmem_limit_bytes=vmem_limit,
        )
        out = pl.pallas_call(
            _transfer_kernel,
            out_shape=out_shape,
            grid_spec=pl.GridSpec(
                grid=(grid_m,),
                in_specs=[
                    pl.BlockSpec((tile_m, in_dim), lambda i: (i, 0)),    # x tile
                    pl.BlockSpec((in_dim, out_dim), lambda i: (0, 0)),   # W (resident)
                    pl.BlockSpec((3, out_dim), lambda i: (0, 0)),        # packed params
                ],
                out_specs=pl.BlockSpec((tile_m, out_dim), lambda i: (i, 0)),
            ),
            cost_estimate=cost,
            compiler_params=cparams,
        )(x, w, params)

    return out[:B] if rows != B else out


if __name__ == "__main__":
    # Small shapes consistent with the module: a batch of audio embeddings.
    B, in_dim, out_dim = 16, 32, 128

    key = jax.random.PRNGKey(0)
    kx, kw, kb, ks, kbias = jax.random.split(key, 5)

    x = jax.random.normal(kx, (B, in_dim), dtype=jnp.float32)

    # nn.Linear(in_dim, out_dim): weight [out_dim, in_dim], bias [out_dim];
    # stored here pre-transposed as [in_dim, out_dim].
    w_f32 = jax.random.normal(kw, (in_dim, out_dim), dtype=jnp.float32) * 0.1
    lin_b = jax.random.normal(kb, (out_dim,), dtype=jnp.float32) * 0.1
    # std/bias are zero-init in the PyTorch module (loaded later); use non-zero
    # deterministic values here so the full compute path is exercised.
    std = jax.random.normal(ks, (out_dim,), dtype=jnp.float32) * 0.5
    bias = jax.random.normal(kbias, (out_dim,), dtype=jnp.float32) * 0.5

    # ---- weight-load-time preprocessing (done once, outside the call path) --
    w = jax.block_until_ready(w_f32.astype(jnp.bfloat16))
    params = jax.block_until_ready(pack_transfer_params(lin_b, std, bias))

    # ---- shipped case: B=16 -> single block, grid=() ------------------------
    out = jax.block_until_ready(transfer_net_forward(x, w, params))
    assert out.shape == (B, out_dim)

    # Reference with the same bf16-rounded operands (f32 accumulate): tight tol.
    wf = w.astype(jnp.float32)
    xb = x.astype(jnp.bfloat16).astype(jnp.float32)
    ref = jnp.tanh(jnp.dot(xb, wf, precision=jax.lax.Precision.HIGHEST) + lin_b) \
        * 2.0 * std + bias
    assert jnp.allclose(out, ref, atol=2e-3, rtol=2e-3), "mismatch vs bf16 reference"
    # Coarse check against the exact f32 module semantics (bf16 weight storage).
    ref_f32 = jnp.tanh(x @ w_f32 + lin_b) * 2.0 * std + bias
    assert jnp.allclose(out, ref_f32, atol=1e-1, rtol=1e-1), "mismatch vs f32 reference"

    # ---- awkward batch: exercises zero-padding + multi-step 'parallel' grid -
    B2 = 200
    x2 = jax.random.normal(jax.random.PRNGKey(1), (B2, in_dim), dtype=jnp.float32)
    out2 = jax.block_until_ready(transfer_net_forward(x2, w, params, max_tile_m=64))
    x2b = x2.astype(jnp.bfloat16).astype(jnp.float32)
    ref2 = jnp.tanh(jnp.dot(x2b, wf, precision=jax.lax.Precision.HIGHEST) + lin_b) \
        * 2.0 * std + bias
    assert out2.shape == (B2, out_dim)
    assert jnp.allclose(out2, ref2, atol=2e-3, rtol=2e-3), "mismatch vs reference (B=200)"

    print("KERNEL_OK")
</pallas_src>

<mosaic_0001>
module attributes {stable_mosaic.version = 11 : i64} {
  func.func @_transfer_kernel(%arg0: memref<16x32xf32, #tpu.memory_space<vmem>>, %arg1: memref<32x128xbf16, #tpu.memory_space<vmem>>, %arg2: memref<3x128xf32, #tpu.memory_space<vmem>>, %arg3: memref<16x128xf32, #tpu.memory_space<vmem>>) attributes {dimension_semantics = [], scalar_prefetch = 0 : i64, scratch_operands = 0 : i64, tpu.core_type = #tpu.core_type<tc>} {
    %c0 = arith.constant 0 : index
    %c0_0 = arith.constant 0 : index
    %0 = vector.load %arg1[%c0, %c0_0] : memref<32x128xbf16, #tpu.memory_space<vmem>>, vector<32x128xbf16>
    %c0_1 = arith.constant 0 : index
    %c0_2 = arith.constant 0 : index
    %1 = vector.load %arg0[%c0_1, %c0_2] : memref<16x32xf32, #tpu.memory_space<vmem>>, vector<16x32xf32>
    %2 = arith.truncf %1 : vector<16x32xf32> to vector<16x32xbf16>
    %cst = arith.constant dense<0.000000e+00> : vector<16x128xf32>
    %3 = tpu.matmul %2, %0, %cst {dimension_numbers = #tpu.dot_dimension_numbers<[1], [0], [0], [1], [0, 0, 1, 1], [], []>} : vector<16x32xbf16>, vector<32x128xbf16>, vector<16x128xf32> -> vector<16x128xf32>
    %c0_3 = arith.constant 0 : index
    %c0_4 = arith.constant 0 : index
    %4 = vector.load %arg2[%c0_3, %c0_4] : memref<3x128xf32, #tpu.memory_space<vmem>>, vector<3x128xf32>
    %5 = vector.extract_strided_slice %4 {offsets = [0, 0], sizes = [1, 128], strides = [1, 1]} : vector<3x128xf32> to vector<1x128xf32>
    %6 = vector.broadcast %5 : vector<1x128xf32> to vector<16x128xf32>
    %7 = arith.addf %3, %6 : vector<16x128xf32>
    %8 = math.tanh %7 : vector<16x128xf32>
    %9 = vector.extract_strided_slice %4 {offsets = [1, 0], sizes = [1, 128], strides = [1, 1]} : vector<3x128xf32> to vector<1x128xf32>
    %10 = vector.broadcast %9 : vector<1x128xf32> to vector<16x128xf32>
    %11 = arith.mulf %8, %10 : vector<16x128xf32>
    %12 = vector.extract_strided_slice %4 {offsets = [2, 0], sizes = [1, 128], strides = [1, 1]} : vector<3x128xf32> to vector<1x128xf32>
    %13 = vector.broadcast %12 : vector<1x128xf32> to vector<16x128xf32>
    %14 = arith.addf %11, %13 : vector<16x128xf32>
    %c0_5 = arith.constant 0 : index
    %c0_6 = arith.constant 0 : index
    %15 = vector.load %arg3[%c0_5, %c0_6] : memref<16x128xf32, #tpu.memory_space<vmem>>, vector<16x128xf32>
    tpu.vector_store %arg3[%c0_5, %c0_6], %14 {strides = array<i32>} : memref<16x128xf32, #tpu.memory_space<vmem>>, vector<16x128xf32>,
    return
  }
}

</mosaic_0001>

<bundles_post_ra>
// kernel: tpu_custom_call.1
= control target key start
LH: loop header
LB: loop body
LE: loop exit
PB: predicated region body
PF: predicated region fallthrough
CT: control target
= control target key end

     0   :  { %8 = vsyncpa [#allocation3], 0  ;;  %s322_s0 = inlined_call_operand.hbm [shape: f32[16,32], index: 0, kind: input, shape index: {}]   ;;  %s323_s1 = inlined_call_operand.hbm [shape: bf16[32,128], index: 1, kind: input, shape index: {}]   ;;  %s324_s2 = inlined_call_operand.vmem [shape: f32[3,128], index: 2, kind: input, shape index: {}]   ;;  %s325_s3 = inlined_call_operand.hbm [shape: f32[16,128], index: 3, kind: output, shape index: {}]  }
   0x1   :  { %9 = vsyncpa [#allocation6], 0 }
   0x2   :  { %10 = vsyncpa [#allocation4], 0  ;;  %s248_s12 = smov [#allocation2]   ;;  %s176_s16 = scalar_lea.hbm %s322_s0, 256 }
   0x3   :  { %s16_s13 = sshll.u32 %s248_s12, 4  ;;  %p177_p0 = scmp.ne.s32.totalorder %s322_s0, %s176_s16  ;;  %s17_s13 = int_to_ptr.vmem [resolvable:$true] %s16_s13 }
   0x4   :  { %p180_p1 = scmp.lt.u32.totalorder %s176_s16, %s322_s0 }
   0x6   :  { %p182_p2 = pnand %p180_p1, %p177_p0 }
   0x8   :  { %185 = shalt.err (!%p182_p2)
}
   0x9   :  { %s186_s21 = scalar_lea.vmem %s17_s13, 256  ;;  %p191_p4 = scmp.lt.s32.totalorder %s17_s13, %s17_s13 }
   0xa   :  { %p187_p3 = scmp.ne.s32.totalorder %s17_s13, %s186_s21  ;;  %p192_p5 = scmp.lt.s32.totalorder %s186_s21, %s186_s21 }
   0xc   :  { %p193_p6 = por %p192_p5, %p191_p4 }
   0xe   :  { %p194_p7 = pnand %p193_p6, %p187_p3 }
  0x10   :  { %197 = shalt.err (!%p194_p7)
}
  0x11   :  { %s249_s22 = smov 128   ;;  %s250_s23 = smov 8  }
  0x12   :  { %22 = dma.hbm_to_vmem [thread:$0]  %s322_s0, 256, %s17_s13, [#allocation3], %s249_s22, %s249_s22, %s250_s23  }
  0x13   :  { %s251_s26 = smov [#allocation5]   ;;  %s198_s30 = scalar_lea.hbm %s323_s1, 256 }
  0x14   :  { %s28_s27 = sshll.u32 %s251_s26, 4  ;;  %p199_p8 = scmp.ne.s32.totalorder %s323_s1, %s198_s30  ;;  %s29_s27 = int_to_ptr.vmem [resolvable:$true] %s28_s27 }
  0x15   :  { %p202_p9 = scmp.lt.u32.totalorder %s198_s30, %s323_s1 }
  0x17   :  { %p204_p10 = pnand %p202_p9, %p199_p8 }
  0x19   :  { %207 = shalt.err (!%p204_p10)
}
  0x1a   :  { %s208_s8 = scalar_lea.vmem %s29_s27, 256  ;;  %p213_p12 = scmp.lt.s32.totalorder %s29_s27, %s29_s27 }
  0x1b   :  { %p209_p11 = scmp.ne.s32.totalorder %s29_s27, %s208_s8  ;;  %p214_p13 = scmp.lt.s32.totalorder %s208_s8, %s208_s8 }
  0x1d   :  { %p215_p0 = por %p214_p13, %p213_p12 }
  0x1f   :  { %p216_p1 = pnand %p215_p0, %p209_p11 }
  0x21   :  { %219 = shalt.err (!%p216_p1)
}
  0x22   :  { %s252_s0 = smov 64   ;;  %s253_s9 = smov 4  }
  0x23   :  { %34 = dma.hbm_to_vmem [thread:$0]  %s323_s1, 256, %s29_s27, [#allocation6], %s252_s0, %s252_s0, %s253_s9  }
  0x24   :  { %242 = dma.done.wait [#allocation3], 256  }
  0x25   :  { %243 = vsyncadd [#allocation3], 4294967040 }
  0x26   :  { %244 = dma.done.wait [#allocation6], 256  }
  0x27   :  { %245 = vsyncadd [#allocation6], 4294967040  ;;  %v254_v0 = vmov 0.0   ;;  %vm255_vm0 = vmmov 0   ;;  %v170_v1 = vld [vmem:[#allocation5] sm:$0xff]   ;;  %v171_v2 = vld [vmem:[#allocation5 + $0x8] sm:$0xff]   ;;  %v52_v6 = vlaneseq }
  0x28   :  { %153 = vmatprep.subr.bf16.mxu0 %v254_v0  ;;  %157 = vmatprep.mubr.msk.bf16.mxu0 %vm255_vm0, %v254_v0  ;;  %v48_v3 = vld [vmem:[#allocation2] sm:$0xff]  ;;  %v49_v4 = vld [vmem:[#allocation2 + $0x8] sm:$0xff]  ;;  %vm68_vm1 = vcmask 261120   ;;  %s256_s13 = smov [#allocation7]  }
  0x29   :  { %154 = vmatpush3.bf16.msra.mxu0 %v170_v1  ;;  %v50_v5 = vpack.c.bf16 %v49_v4, %v48_v3  ;;  %v53_v7 = vshrl.u32 %v52_v6, 7  ;;  %v51_v9 = vld [vmem:[%s324_s2] sm:$0x7]  ;;  %s134_s14 = sshll.u32 %s256_s13, 4  ;;  %s135_s14 = int_to_ptr.vmem [resolvable:$true] %s134_s14 }
  0x2a   :  { %155 = vmatprep.subr.bf16.mxu0 %v254_v0  ;;  %s220_s2 = scalar_lea.vmem %s135_s14, 256  ;;  %p225_p3 = scmp.lt.s32.totalorder %s135_s14, %s135_s14 }
  0x2b   :  { %v54_v8 = vsub.s32 0, %v53_v7  ;;  %v117_v17 = vsub.s32 1, %v53_v7  ;;  %v123_v18 = vsub.s32 2, %v53_v7  ;;  %p221_p2 = scmp.ne.s32.totalorder %s135_s14, %s220_s2  ;;  %p226_p4 = scmp.lt.s32.totalorder %s220_s2, %s220_s2 }
  0x2d   :  { %156 = vmatpush3.bf16.msra.mxu0 %v171_v2  ;;  %v55_v10 = vrot.slane %v51_v9, %v54_v8  ;;  %v118_v19 = vrot.slane %v51_v9, %v117_v17  ;;  %v124_v20 = vrot.slane %v51_v9, %v123_v18  ;;  %p227_p5 = por %p226_p4, %p225_p3 }
  0x2f   :  { %p228_p6 = pnand %p227_p5, %p221_p2 }
  0x30   :  { %158 = vmatmul.mubr.msk.bf16.vlgmr.msra.gmra.mrb[0].mxu0 %vm68_vm1, %v50_v5 }
 0x103   :  { %v106_v11 = vpop.f32.mrb[0].mxu0 }
 0x104   :  { %v107_v12 = vadd.f32 %v106_v11, %v55_v10  ;;  %v159_v13 = vpop.f32.mrb[1].mxu0 }
 0x105   :  { %v109_v14 = vpop.f32.mrb[2].mxu0 }
 0x106   :  { %172 = vtanh.f32 %v107_v12  ;;  %v110_v15 = vadd.f32 %v109_v14, %v55_v10  ;;  %v160_v16 = vpop.f32.mrb[3].mxu0 }
 0x108   :  { %174 = vtanh.f32 %v110_v15 }
 0x110   :  { %v173_v21 = vpop.eup %172 }
 0x111   :  { %v119_v22 = vmul.f32 %v173_v21, %v118_v19 }
 0x112   :  { %v175_v23 = vpop.eup %174 }
 0x113   :  { %v120_v24 = vmul.f32 %v175_v23, %v118_v19  ;;  %v125_v25 = vadd.f32 %v124_v20, %v119_v22 }
 0x115   :  { %v126_v26 = vadd.f32 %v124_v20, %v120_v24  ;;  %127 = vst [vmem:[#allocation7] sm:$0xff] %v125_v25 }
 0x117   :  { %128 = vst [vmem:[#allocation7 + $0x8] sm:$0xff] %v126_v26 }
 0x118   :  { %231 = shalt.err (!%p228_p6)
}
 0x119   :  { %s232_s17 = scalar_lea.hbm %s325_s3, 256 }
 0x11a   :  { %p233_p7 = scmp.ne.s32.totalorder %s325_s3, %s232_s17  ;;  %p236_p8 = scmp.lt.u32.totalorder %s232_s17, %s325_s3 }
 0x11c   :  { %p238_p9 = pnand %p236_p8, %p233_p7 }
 0x11e   :  { %241 = shalt.err (!%p238_p9)
}
 0x11f   :  { %140 = dma.vmem_to_hbm [thread:$0]  %s135_s14, 256, %s325_s3, [#allocation4], %s249_s22, %s249_s22, %s250_s23  }
 0x120   :  { %246 = dma.done.wait [#allocation4], 256  }
 0x121   :  { %247 = vsyncadd [#allocation4], 4294967040 }
 0x122   :  { %144 = vsyncpa [#allocation3], 1 }
 0x123   :  { %145 = vsyncpa [#allocation6], 1 }
 0x124   :  { %146 = vsyncpa [#allocation4], 1 }

</bundles_post_ra>
